<compile_context>
chip_gen: v7x
topology: tpu7x:2x2x1
jax: 0.10.0
libtpu: 0.0.40
codegen_flags: <defaults>
</compile_context>

<pallas_src>
import jax
import jax.numpy as jnp
from jax.experimental import pallas as pl
from jax.experimental.pallas import tpu as pltpu


def _round_up(n, m):
    return ((n + m - 1) // m) * m


def hw84_kernel(x_ref, w_ref, b_ref, o_ref):
    # Collapsed linear: (tb, 150) f32 @ (150, 3) f32 -> f32, + bias.
    logits = jnp.dot(x_ref[...], w_ref[...],
                     preferred_element_type=jnp.float32) + b_ref[...]
    # Numerically stable softmax over dim=1 (the 3-wide class axis).
    m = jnp.max(logits, axis=-1, keepdims=True)
    e = jnp.exp(logits - m)
    denom = jnp.sum(e, axis=-1, keepdims=True)
    o_ref[...] = (e / denom).astype(o_ref.dtype)


def hw84_forward(x, w1, b1, w2, b2, *, tile_b=4096):
    """x: (B, 150) f32; w1: (150, 64); b1: (64,)/(1,64); w2: (64, 3); b2: (3,)/(1,3)."""
    B, in_dim = x.shape
    out_dim = w2.shape[1]

    # Algebraic collapse of the two bias-only linears (exact in f32 up to rounding):
    #   softmax(x @ w1 @ w2 + (b1 @ w2 + b2))
    w = (w1 @ w2).astype(jnp.float32)                                   # (150, 3)
    b = (b1.reshape(1, -1) @ w2 + b2.reshape(1, -1)).astype(jnp.float32)  # (1, 3)

    # Batch tile: multiple of 8 sublanes, no larger than needed.
    tb = max(8, min(int(tile_b), _round_up(B, 8)))
    tb = _round_up(tb, 8)
    # Ensure >=2 grid steps for moderate/large batches so both TensorCores on v7x
    # get work (no-op on single-TC v5e/v6e, and skipped for tiny batches).
    if B >= 1024:
        tb = min(tb, _round_up(pl.cdiv(B, 2), 8))

    grid = (pl.cdiv(B, tb),)  # ragged last block handled by Pallas; no x copy/pad.

    out = pl.pallas_call(
        hw84_kernel,
        out_shape=jax.ShapeDtypeStruct((B, out_dim), jnp.float32),
        grid=grid,
        in_specs=[
            pl.BlockSpec((tb, in_dim), lambda i: (i, 0)),      # x streams over batch
            pl.BlockSpec((in_dim, out_dim), lambda i: (0, 0)),  # collapsed W resident
            pl.BlockSpec((1, out_dim), lambda i: (0, 0)),       # collapsed bias resident
        ],
        out_specs=pl.BlockSpec((tb, out_dim), lambda i: (i, 0)),
        compiler_params=pltpu.CompilerParams(
            dimension_semantics=("parallel",),
            vmem_limit_bytes=32 * 1024 * 1024,
        ),
    )(x, w, b)

    return out


def init_linear_params(key, fan_in, fan_out):
    # PyTorch nn.Linear default init: U(-1/sqrt(fan_in), 1/sqrt(fan_in)).
    kw, kb = jax.random.split(key)
    bound = 1.0 / jnp.sqrt(jnp.float32(fan_in))
    # Stored as (fan_in, fan_out) so the forward computes x @ W directly.
    w = jax.random.uniform(kw, (fan_in, fan_out), jnp.float32, -bound, bound)
    bias = jax.random.uniform(kb, (fan_out,), jnp.float32, -bound, bound)
    return w, bias


def _reference(x, w1, b1, w2, b2):
    h = x @ w1 + b1.reshape(1, -1)
    logits = h @ w2 + b2.reshape(1, -1)
    return jax.nn.softmax(logits, axis=1)


if __name__ == "__main__":
    key = jax.random.PRNGKey(0)
    kx, k1, k2, kx2 = jax.random.split(key, 4)

    B, IN, HID, OUT = 8, 150, 64, 3
    x = jax.random.normal(kx, (B, IN), jnp.float32)
    w1, b1 = init_linear_params(k1, IN, HID)
    w2, b2 = init_linear_params(k2, HID, OUT)

    # Small single-tile case (B=8).
    out = jax.block_until_ready(hw84_forward(x, w1, b1, w2, b2))
    ref = _reference(x, w1, b1, w2, b2)
    assert out.shape == (B, OUT)
    assert jnp.allclose(out, ref, atol=1e-3), "mismatch vs f32 reference (B=8)"
    assert jnp.allclose(jnp.sum(out, axis=1), jnp.ones((B,)), atol=1e-4)

    # Multi-tile + ragged-last-block path (B not a multiple of the tile).
    B2 = 20
    x2 = jax.random.normal(kx2, (B2, IN), jnp.float32)
    out2 = jax.block_until_ready(hw84_forward(x2, w1, b1, w2, b2, tile_b=8))
    ref2 = _reference(x2, w1, b1, w2, b2)
    assert out2.shape == (B2, OUT)
    assert jnp.allclose(out2, ref2, atol=1e-3), "mismatch vs f32 reference (B=20)"
    assert jnp.allclose(jnp.sum(out2, axis=1), jnp.ones((B2,)), atol=1e-4)

    print("KERNEL_OK")
</pallas_src>

<mosaic_0001>
module attributes {stable_mosaic.version = 11 : i64} {
  func.func @hw84_kernel(%arg0: i32, %arg1: memref<8x150xf32, #tpu.memory_space<vmem>>, %arg2: memref<150x3xf32, #tpu.memory_space<vmem>>, %arg3: memref<1x3xf32, #tpu.memory_space<vmem>>, %arg4: memref<8x3xf32, #tpu.memory_space<vmem>>) attributes {dimension_semantics = [#tpu.dimension_semantics<parallel>], iteration_bounds = array<i64: 1>, scalar_prefetch = 0 : i64, scratch_operands = 0 : i64, tpu.core_type = #tpu.core_type<tc>, window_params = [{transform_indices = @transform_0, window_bounds = array<i64: 8, 150>}, {pipeline_mode = #tpu.pipeline_mode<synchronous>, transform_indices = @transform_1, window_bounds = array<i64: 150, 3>}, {pipeline_mode = #tpu.pipeline_mode<synchronous>, transform_indices = @transform_2, window_bounds = array<i64: 1, 3>}, {transform_indices = @transform_3, window_bounds = array<i64: 8, 3>}]} {
    %c0 = arith.constant 0 : index
    %c0_0 = arith.constant 0 : index
    %0 = vector.load %arg1[%c0, %c0_0] : memref<8x150xf32, #tpu.memory_space<vmem>>, vector<8x150xf32>
    %c0_1 = arith.constant 0 : index
    %c0_2 = arith.constant 0 : index
    %1 = vector.load %arg2[%c0_1, %c0_2] : memref<150x3xf32, #tpu.memory_space<vmem>>, vector<150x3xf32>
    %cst = arith.constant dense<0.000000e+00> : vector<8x3xf32>
    %2 = tpu.matmul %0, %1, %cst {dimension_numbers = #tpu.dot_dimension_numbers<[1], [0], [0], [1], [0, 0, 1, 1], [], []>} : vector<8x150xf32>, vector<150x3xf32>, vector<8x3xf32> -> vector<8x3xf32>
    %c0_3 = arith.constant 0 : index
    %c0_4 = arith.constant 0 : index
    %3 = vector.load %arg3[%c0_3, %c0_4] : memref<1x3xf32, #tpu.memory_space<vmem>>, vector<1x3xf32>
    %4 = vector.broadcast %3 : vector<1x3xf32> to vector<8x3xf32>
    %5 = arith.addf %2, %4 : vector<8x3xf32>
    %cst_5 = arith.constant dense<0xFF800000> : vector<8xf32>
    %6 = vector.multi_reduction <maximumf>, %5, %cst_5 [1] : vector<8x3xf32> to vector<8xf32>
    %7 = vector.shape_cast %6 : vector<8xf32> to vector<8x1xf32>
    %8 = vector.broadcast %7 : vector<8x1xf32> to vector<8x3xf32>
    %9 = arith.subf %5, %8 : vector<8x3xf32>
    %10 = math.exp %9 : vector<8x3xf32>
    %cst_6 = arith.constant dense<0.000000e+00> : vector<8xf32>
    %11 = vector.multi_reduction <add>, %10, %cst_6 [1] : vector<8x3xf32> to vector<8xf32>
    %12 = vector.shape_cast %11 : vector<8xf32> to vector<8x1xf32>
    %13 = vector.broadcast %12 : vector<8x1xf32> to vector<8x3xf32>
    %14 = arith.divf %10, %13 : vector<8x3xf32>
    %c0_7 = arith.constant 0 : index
    %c0_8 = arith.constant 0 : index
    %15 = vector.load %arg4[%c0_7, %c0_8] : memref<8x3xf32, #tpu.memory_space<vmem>>, vector<8x3xf32>
    tpu.vector_store %arg4[%c0_7, %c0_8], %14 {strides = array<i32>} : memref<8x3xf32, #tpu.memory_space<vmem>>, vector<8x3xf32>,
    return
  }
  func.func @transform_0(%arg0: i32) -> (i32, i32) {
    %c0_i32 = arith.constant 0 : i32
    %c0_i32_0 = arith.constant 0 : i32
    return %arg0, %c0_i32 : i32, i32
  }
  func.func @transform_1(%arg0: i32) -> (i32, i32) {
    %c0_i32 = arith.constant 0 : i32
    %c0_i32_0 = arith.constant 0 : i32
    %c0_i32_1 = arith.constant 0 : i32
    return %c0_i32, %c0_i32_0 : i32, i32
  }
  func.func @transform_2(%arg0: i32) -> (i32, i32) {
    %c0_i32 = arith.constant 0 : i32
    %c0_i32_0 = arith.constant 0 : i32
    %c0_i32_1 = arith.constant 0 : i32
    return %c0_i32, %c0_i32_0 : i32, i32
  }
  func.func @transform_3(%arg0: i32) -> (i32, i32) {
    %c0_i32 = arith.constant 0 : i32
    %c0_i32_0 = arith.constant 0 : i32
    return %arg0, %c0_i32 : i32, i32
  }
}

</mosaic_0001>

<bundles_post_ra>
// kernel: tpu_custom_call.1
= control target key start
LH: loop header
LB: loop body
LE: loop exit
PB: predicated region body
PF: predicated region fallthrough
CT: control target
= control target key end

     0   :  { %v173_v0 = vmov 0.0|0.0   ;;  %vm42_vm0 = vcmask 179200   ;;  %v174_v29 = vmov 0.0   ;;  %vm46_vm1 = vcmask 1045504   ;;  %s267_s1 = inlined_call_operand.vmem [shape: f32[150,3], index: 1, kind: input, shape index: {}]   ;;  %s268_s0 = inlined_call_operand.vmem [shape: f32[8,150], index: 0, kind: input, shape index: {}]   ;;  %s269_s2 = inlined_call_operand.vmem [shape: f32[1,3], index: 2, kind: input, shape index: {}]   ;;  %s270_s3 = inlined_call_operand.vmem [shape: f32[8,3], index: 3, kind: output, shape index: {}]  }
   0x1   :  { %140 = vmatprep.subr.bf16.mxu0 %v173_v0  ;;  %v16_v1 = vld [vmem:[%s267_s1] sm:$0xff]  ;;  %v17_v2 = vld [vmem:[%s267_s1 + $0x8] sm:$0xff]  ;;  %v18_v3 = vld [vmem:[%s267_s1 + $0x10] sm:$0xff]  ;;  %vm120_vm2 = vcmask 23552  }
   0x2   :  { %v141_v4 = vpack.c.bf16 %v17_v2, %v16_v1  ;;  %v19_v5 = vld [vmem:[%s267_s1 + $0x18] sm:$0xff]  ;;  %v20_v7 = vld [vmem:[%s267_s1 + $0x20] sm:$0xff]  ;;  %v21_v8 = vld [vmem:[%s267_s1 + $0x28] sm:$0xff] }
   0x3   :  { %v144_v6 = vpack.c.bf16 %v19_v5, %v18_v3  ;;  %v15_v9 = vld [vmem:[%s268_s0 + $0x8] sm:$0xff]  ;;  %v147_v10 = vpack.c.bf16 %v21_v8, %v20_v7  ;;  %v22_v11 = vld [vmem:[%s267_s1 + $0x30] sm:$0xff]  ;;  %v23_v12 = vld [vmem:[%s267_s1 + $0x38] sm:$0xff] }
   0x4   :  { %142 = vmatpush1.bf16.msra.mxu0 %v141_v4  ;;  %139 = vmatprep.mubr.msk.f32.mxu0 %vm42_vm0, %v15_v9  ;;  %v150_v13 = vpack.c.bf16 %v23_v12, %v22_v11  ;;  %v24_v14 = vld [vmem:[%s267_s1 + $0x40] sm:$0xff]  ;;  %v25_v15 = vld [vmem:[%s267_s1 + $0x48] sm:$0xff]  ;;  %v26_v17 = vld [vmem:[%s267_s1 + $0x50] sm:$0xff] }
   0x5   :  { %143 = vmatprep.subr.bf16.mxu0 %v173_v0  ;;  %v153_v16 = vpack.c.bf16 %v25_v15, %v24_v14  ;;  %v27_v18 = vld [vmem:[%s267_s1 + $0x58] sm:$0xff]  ;;  %v28_v20 = vld [vmem:[%s267_s1 + $0x60] sm:$0xff]  ;;  %v29_v21 = vld [vmem:[%s267_s1 + $0x68] sm:$0xff] }
   0x6   :  { %v156_v19 = vpack.c.bf16 %v27_v18, %v26_v17  ;;  %v159_v22 = vpack.c.bf16 %v29_v21, %v28_v20  ;;  %v30_v23 = vld [vmem:[%s267_s1 + $0x70] sm:$0xff]  ;;  %v31_v24 = vld [vmem:[%s267_s1 + $0x78] sm:$0xff]  ;;  %v32_v26 = vld [vmem:[%s267_s1 + $0x80] sm:$0xff] }
   0x7   :  { %v162_v25 = vpack.c.bf16 %v31_v24, %v30_v23  ;;  %v33_v27 = vld [vmem:[%s267_s1 + $0x88] sm:$0xff]  ;;  %v34_v30 = vld [vmem:[%s267_s1 + $0x90] sm:$0x3f]  ;;  %v14_v31 = vld [vmem:[%s268_s0] sm:$0xff] }
   0x8   :  { %145 = vmatpush1.bf16.msra.mxu0 %v144_v6  ;;  %v165_v28 = vpack.c.bf16 %v33_v27, %v32_v26  ;;  %v137_v32 = vld [vmem:[%s269_s2] ss:$0 sm:$0xff] }
   0x9   :  { %146 = vmatprep.subr.bf16.mxu0 %v173_v0 }
   0xc   :  { %148 = vmatpush1.bf16.msra.mxu0 %v147_v10 }
   0xd   :  { %149 = vmatprep.subr.bf16.mxu0 %v173_v0 }
  0x10   :  { %151 = vmatpush1.bf16.msra.mxu0 %v150_v13 }
  0x11   :  { %152 = vmatprep.subr.bf16.mxu0 %v173_v0 }
  0x14   :  { %154 = vmatpush1.bf16.msra.mxu0 %v153_v16 }
  0x15   :  { %155 = vmatprep.subr.bf16.mxu0 %v173_v0 }
  0x18   :  { %157 = vmatpush1.bf16.msra.mxu0 %v156_v19 }
  0x19   :  { %158 = vmatprep.subr.bf16.mxu0 %v173_v0 }
  0x1c   :  { %160 = vmatpush1.bf16.msra.mxu0 %v159_v22 }
  0x1d   :  { %161 = vmatprep.subr.bf16.mxu0 %v173_v0 }
  0x20   :  { %163 = vmatpush1.bf16.msra.mxu0 %v162_v25 }
  0x21   :  { %164 = vmatprep.subr.bf16.mxu0 %v173_v0 }
  0x24   :  { %166 = vmatpush1.bf16.msra.mxu0 %v165_v28 }
  0x25   :  { %86 = vmatprep.subr.mxu0 %v174_v29 }
  0x28   :  { %138 = vmatpush1.msk.msra.mxu0 %vm46_vm1, %v34_v30 }
  0x29   :  { %115 = vmatmul.mubr.f32.vlgmr.msra.gmra.mrb[0].mxu0 %v14_v31 }
  0xfc   :  { %v116_v33 = vpop.f32.mrb[0].mxu0 }
  0xfd   :  { %v117_v34 = vadd.f32 %v137_v32, %v116_v33  ;;  %v118_v35 = vpop.f32.mrb[1].mxu0 }
  0xff   :  { %v121_v36 = vsel %vm120_vm2, %v117_v34, -inf }
 0x100   :  { %122 = vmax.xlane.f32.xlu0 %v121_v36 }
 0x18d   :  { %v123_v37 = vpop.xlane.xlu0 %122 }
 0x18e   :  { %v124_v38 = vsub.f32 %v117_v34, %v123_v37 }
 0x190   :  { %v125_v39 = vmul.f32 1.442695, %v124_v38 }
 0x192   :  { %169 = vpow2.f32 %v125_v39 }
 0x19c   :  { %v170_v40 = vpop.eup %169 }
 0x19d   :  { %v127_v41 = vsel %vm120_vm2, %v170_v40, 0.0 }
 0x19e   :  { %128 = vadd.xlane.f32.xlu0 %v127_v41 }
 0x22b   :  { %v129_v42 = vpop.xlane.xlu0 %128 }
 0x22c   :  { %171 = vrcp.f32 %v129_v42 }
 0x236   :  { %v172_v43 = vpop.eup %171 }
 0x237   :  { %v131_v44 = vmul.f32 %v172_v43, %v170_v40 }
 0x239   :  { %132 = vst.msk [vmem:[%s270_s3] sm:$0xff] %vm120_vm2, %v131_v44 }

</bundles_post_ra>
